<compile_context>
chip_gen: v7x
topology: tpu7x:2x2x1
jax: 0.10.0
libtpu: 0.0.40
codegen_flags: <defaults>
</compile_context>

<pallas_src>
import math

import jax
import jax.numpy as jnp
from jax.experimental import pallas as pl
from jax.experimental.pallas import tpu as pltpu


# ----------------------------- kernel ---------------------------------------

def cross_attention_kernel(
    xq_ref, xkv_ref, mask_ref,
    wq_ref, bq_ref, wk_ref, bk_ref, wv_ref, bv_ref, wo_ref, bo_ref,
    o_ref, acc_ref,
):
    """One (batch, q_tile, head) grid step of cross attention."""
    h = pl.program_id(2)

    @pl.when(h == 0)
    def _init():
        acc_ref[...] = jnp.zeros_like(acc_ref)

    xq = xq_ref[...].astype(jnp.bfloat16)      # (tq, D)
    xkv = xkv_ref[...].astype(jnp.bfloat16)    # (Skv, D)

    # Per-head projections; wq/bq already carry the 1/sqrt(head_dim) scale.
    q = jnp.dot(xq, wq_ref[...], preferred_element_type=jnp.float32) + bq_ref[...]   # (tq, hd)
    k = jnp.dot(xkv, wk_ref[...], preferred_element_type=jnp.float32) + bk_ref[...]  # (Skv, hd)
    v = jnp.dot(xkv, wv_ref[...], preferred_element_type=jnp.float32) + bv_ref[...]  # (Skv, hd)

    # scores = q @ k^T without an explicit transpose: contract on last dims.
    s = jax.lax.dot_general(
        q.astype(jnp.bfloat16), k.astype(jnp.bfloat16),
        dimension_numbers=(((1,), (1,)), ((), ())),
        preferred_element_type=jnp.float32)                      # (tq, Skv)
    s = s + mask_ref[...]                                        # additive mask, f32

    # softmax in f32; reciprocal goes to the otherwise-idle EUP slot.
    s = s - jnp.max(s, axis=-1, keepdims=True)
    e = jnp.exp(s)
    p = e * pl.reciprocal(jnp.sum(e, axis=-1, keepdims=True), approx=True)
    # TODO(synk): training-mode dropout on attention weights not implemented (eval identity).

    ctx = jnp.dot(p.astype(jnp.bfloat16), v.astype(jnp.bfloat16),
                  preferred_element_type=jnp.float32)            # (tq, hd)

    # concat_h(ctx_h) @ Wo  ==  sum_h ctx_h @ Wo[h*hd:(h+1)*hd, :]
    acc_ref[...] += jnp.dot(ctx.astype(jnp.bfloat16), wo_ref[...],
                            preferred_element_type=jnp.float32)  # (tq, D)

    @pl.when(h == pl.num_programs(2) - 1)
    def _finalize():
        o_ref[...] = (acc_ref[...] + bo_ref[...]).astype(o_ref.dtype)


# ----------------------------- wrapper ---------------------------------------

def cross_attention(query_input, key_value_input, mask, params, num_heads):
    """CrossAttention forward.

    query_input:      (B, Sq, D)   -- "English"
    key_value_input:  (B, Skv, D)  -- "Italian"
    mask:             (Sq, Skv) additive mask broadcast over batch and heads
    params: wq/wk/wv/wo: (D, D) in (in, out) layout; bq/bk/bv/bo: (1, D).
    """
    B, Sq, D = query_input.shape
    _, Skv, _ = key_value_input.shape
    H = num_heads
    hd = D // H
    scale = 1.0 / math.sqrt(hd)

    # Query-tile size: full Sq when small, otherwise MXU-friendly 128-row tiles.
    tq = Sq if Sq <= 128 else 128
    assert Sq % tq == 0, "Sq must be a multiple of the query tile size"
    n_q = Sq // tq

    # Pre-split weights per head in the wrapper (free, runs once in HBM),
    # bake the 1/sqrt(hd) scale into the Q projection, cast matmul weights
    # to bf16 (halves weight DMA bytes).  Biases stay f32.
    wq_h = ((params["wq"] * scale).reshape(D, H, hd)
            .transpose(1, 0, 2).astype(jnp.bfloat16))            # (H, D, hd)
    wk_h = params["wk"].reshape(D, H, hd).transpose(1, 0, 2).astype(jnp.bfloat16)
    wv_h = params["wv"].reshape(D, H, hd).transpose(1, 0, 2).astype(jnp.bfloat16)
    wo_h = params["wo"].reshape(H, hd, D).astype(jnp.bfloat16)   # (H, hd, D)
    bq_h = (params["bq"] * scale).reshape(1, H, hd).transpose(1, 0, 2)  # (H, 1, hd)
    bk_h = params["bk"].reshape(1, H, hd).transpose(1, 0, 2)
    bv_h = params["bv"].reshape(1, H, hd).transpose(1, 0, 2)
    bo = params["bo"]                                            # (1, D)

    in_specs = [
        pl.BlockSpec((None, tq, D), lambda b, i, h: (b, i, 0)),    # query_input
        pl.BlockSpec((None, Skv, D), lambda b, i, h: (b, 0, 0)),   # key_value_input
        pl.BlockSpec((tq, Skv), lambda b, i, h: (i, 0)),           # mask
        pl.BlockSpec((None, D, hd), lambda b, i, h: (h, 0, 0)),    # wq_h
        pl.BlockSpec((None, 1, hd), lambda b, i, h: (h, 0, 0)),    # bq_h
        pl.BlockSpec((None, D, hd), lambda b, i, h: (h, 0, 0)),    # wk_h
        pl.BlockSpec((None, 1, hd), lambda b, i, h: (h, 0, 0)),    # bk_h
        pl.BlockSpec((None, D, hd), lambda b, i, h: (h, 0, 0)),    # wv_h
        pl.BlockSpec((None, 1, hd), lambda b, i, h: (h, 0, 0)),    # bv_h
        pl.BlockSpec((None, hd, D), lambda b, i, h: (h, 0, 0)),    # wo_h
        pl.BlockSpec((1, D), lambda b, i, h: (0, 0)),              # bo
    ]

    return pl.pallas_call(
        cross_attention_kernel,
        out_shape=jax.ShapeDtypeStruct((B, Sq, D), query_input.dtype),
        grid=(B, n_q, H),
        in_specs=in_specs,
        out_specs=pl.BlockSpec((None, tq, D), lambda b, i, h: (b, i, 0)),
        scratch_shapes=[pltpu.VMEM((tq, D), jnp.float32)],
        compiler_params=pltpu.CompilerParams(
            dimension_semantics=("parallel", "parallel", "arbitrary")),
    )(query_input, key_value_input, mask,
      wq_h, bq_h, wk_h, bk_h, wv_h, bv_h, wo_h, bo)


# ----------------------------- reference (pure JAX, f32) ----------------------

def cross_attention_ref(xq, xkv, mask, p, num_heads):
    B, Sq, D = xq.shape
    Skv = xkv.shape[1]
    hd = D // num_heads
    q = (xq @ p["wq"] + p["bq"]).reshape(B, Sq, num_heads, hd).transpose(0, 2, 1, 3)
    k = (xkv @ p["wk"] + p["bk"]).reshape(B, Skv, num_heads, hd).transpose(0, 2, 1, 3)
    v = (xkv @ p["wv"] + p["bv"]).reshape(B, Skv, num_heads, hd).transpose(0, 2, 1, 3)
    s = jnp.einsum("bhqd,bhkd->bhqk", q, k) / math.sqrt(hd) + mask
    w = jax.nn.softmax(s, axis=-1)
    ctx = jnp.einsum("bhqk,bhkd->bhqd", w, v).transpose(0, 2, 1, 3).reshape(B, Sq, D)
    return ctx @ p["wo"] + p["bo"]


# ----------------------------- main -------------------------------------------

if __name__ == "__main__":
    B, Sq, Skv = 2, 8, 16
    d_model, num_heads = 128, 4   # head_dim = 32; lane-dense (128) feature dim

    key = jax.random.PRNGKey(0)
    ks = jax.random.split(key, 12)

    def w(k, shape, s=0.02):
        return (s * jax.random.normal(k, shape)).astype(jnp.float32)

    params = {
        "wq": w(ks[0], (d_model, d_model)), "bq": w(ks[1], (1, d_model), 0.01),
        "wk": w(ks[2], (d_model, d_model)), "bk": w(ks[3], (1, d_model), 0.01),
        "wv": w(ks[4], (d_model, d_model)), "bv": w(ks[5], (1, d_model), 0.01),
        "wo": w(ks[6], (d_model, d_model)), "bo": w(ks[7], (1, d_model), 0.01),
    }

    x_en = jax.random.normal(ks[8], (B, Sq, d_model), jnp.float32)    # query (English)
    x_it = jax.random.normal(ks[9], (B, Skv, d_model), jnp.float32)   # key/value (Italian)

    # additive key-padding mask: last 3 key positions masked out
    key_valid = jnp.arange(Skv) < (Skv - 3)
    mask = jnp.where(key_valid[None, :], 0.0, -1e9).astype(jnp.float32)
    mask = jnp.broadcast_to(mask, (Sq, Skv))

    out = cross_attention(x_en, x_it, mask, params, num_heads)
    out = jax.block_until_ready(out)

    ref = cross_attention_ref(x_en, x_it, mask, params, num_heads)
    ref = jax.block_until_ready(ref)

    assert out.shape == (B, Sq, d_model)
    max_err = float(jnp.max(jnp.abs(out - ref)))
    # bf16 matmul operands + approx softmax reciprocal vs. f32 reference.
    assert max_err < 1e-2, max_err
    print("KERNEL_OK")
</pallas_src>

<mosaic_0001>
module attributes {stable_mosaic.version = 11 : i64} {
  func.func @cross_attention_kernel(%arg0: i32, %arg1: i32, %arg2: i32, %arg3: memref<1x8x128xf32, #tpu.memory_space<vmem>>, %arg4: memref<1x16x128xf32, #tpu.memory_space<vmem>>, %arg5: memref<8x16xf32, #tpu.memory_space<vmem>>, %arg6: memref<1x128x32xbf16, #tpu.memory_space<vmem>>, %arg7: memref<1x1x32xf32, #tpu.memory_space<vmem>>, %arg8: memref<1x128x32xbf16, #tpu.memory_space<vmem>>, %arg9: memref<1x1x32xf32, #tpu.memory_space<vmem>>, %arg10: memref<1x128x32xbf16, #tpu.memory_space<vmem>>, %arg11: memref<1x1x32xf32, #tpu.memory_space<vmem>>, %arg12: memref<1x32x128xbf16, #tpu.memory_space<vmem>>, %arg13: memref<1x128xf32, #tpu.memory_space<vmem>>, %arg14: memref<1x8x128xf32, #tpu.memory_space<vmem>>, %arg15: memref<8x128xf32, #tpu.memory_space<vmem>>) attributes {dimension_semantics = [#tpu.dimension_semantics<parallel>, #tpu.dimension_semantics<parallel>, #tpu.dimension_semantics<arbitrary>], iteration_bounds = array<i64: 2, 1, 4>, scalar_prefetch = 0 : i64, scratch_operands = 1 : i64, tpu.core_type = #tpu.core_type<tc>, window_params = [{transform_indices = @transform_0, window_bounds = array<i64: 1, 8, 128>}, {transform_indices = @transform_1, window_bounds = array<i64: 1, 16, 128>}, {transform_indices = @transform_2, window_bounds = array<i64: 8, 16>}, {transform_indices = @transform_3, window_bounds = array<i64: 1, 128, 32>}, {transform_indices = @transform_4, window_bounds = array<i64: 1, 1, 32>}, {transform_indices = @transform_5, window_bounds = array<i64: 1, 128, 32>}, {transform_indices = @transform_6, window_bounds = array<i64: 1, 1, 32>}, {transform_indices = @transform_7, window_bounds = array<i64: 1, 128, 32>}, {transform_indices = @transform_8, window_bounds = array<i64: 1, 1, 32>}, {transform_indices = @transform_9, window_bounds = array<i64: 1, 32, 128>}, {pipeline_mode = #tpu.pipeline_mode<synchronous>, transform_indices = @transform_10, window_bounds = array<i64: 1, 128>}, {transform_indices = @transform_11, window_bounds = array<i64: 1, 8, 128>}]} {
    %c0_i32 = arith.constant 0 : i32
    %0 = arith.cmpi eq, %arg2, %c0_i32 : i32
    %1 = arith.extui %0 : i1 to i32
    %c0_i32_0 = arith.constant 0 : i32
    %2 = arith.cmpi ne, %1, %c0_i32_0 : i32
    scf.if %2 {
      %cst_41 = arith.constant 0.000000e+00 : f32
      %58 = vector.broadcast %cst_41 : f32 to vector<8x128xf32>
      %c0_42 = arith.constant 0 : index
      %c0_43 = arith.constant 0 : index
      %59 = vector.load %arg15[%c0_42, %c0_43] : memref<8x128xf32, #tpu.memory_space<vmem>>, vector<8x128xf32>
      tpu.vector_store %arg15[%c0_42, %c0_43], %58 {strides = array<i32>} : memref<8x128xf32, #tpu.memory_space<vmem>>, vector<8x128xf32>,
    } else {
    }
    %c0 = arith.constant 0 : index
    %c0_1 = arith.constant 0 : index
    %c0_2 = arith.constant 0 : index
    %3 = vector.load %arg3[%c0, %c0_1, %c0_2] : memref<1x8x128xf32, #tpu.memory_space<vmem>>, vector<1x8x128xf32>
    %4 = vector.shape_cast %3 : vector<1x8x128xf32> to vector<8x128xf32>
    %5 = arith.truncf %4 : vector<8x128xf32> to vector<8x128xbf16>
    %c0_3 = arith.constant 0 : index
    %c0_4 = arith.constant 0 : index
    %c0_5 = arith.constant 0 : index
    %6 = vector.load %arg4[%c0_3, %c0_4, %c0_5] : memref<1x16x128xf32, #tpu.memory_space<vmem>>, vector<1x16x128xf32>
    %7 = vector.shape_cast %6 : vector<1x16x128xf32> to vector<16x128xf32>
    %8 = arith.truncf %7 : vector<16x128xf32> to vector<16x128xbf16>
    %c0_6 = arith.constant 0 : index
    %c0_7 = arith.constant 0 : index
    %c0_8 = arith.constant 0 : index
    %9 = vector.load %arg6[%c0_6, %c0_7, %c0_8] : memref<1x128x32xbf16, #tpu.memory_space<vmem>>, vector<1x128x32xbf16>
    %10 = vector.shape_cast %9 : vector<1x128x32xbf16> to vector<128x32xbf16>
    %cst = arith.constant dense<0.000000e+00> : vector<8x32xf32>
    %11 = tpu.matmul %5, %10, %cst {dimension_numbers = #tpu.dot_dimension_numbers<[1], [0], [0], [1], [0, 0, 1, 1], [], []>} : vector<8x128xbf16>, vector<128x32xbf16>, vector<8x32xf32> -> vector<8x32xf32>
    %c0_9 = arith.constant 0 : index
    %c0_10 = arith.constant 0 : index
    %c0_11 = arith.constant 0 : index
    %12 = vector.load %arg7[%c0_9, %c0_10, %c0_11] : memref<1x1x32xf32, #tpu.memory_space<vmem>>, vector<1x1x32xf32>
    %13 = vector.shape_cast %12 : vector<1x1x32xf32> to vector<1x32xf32>
    %14 = vector.broadcast %13 : vector<1x32xf32> to vector<8x32xf32>
    %15 = arith.addf %11, %14 : vector<8x32xf32>
    %c0_12 = arith.constant 0 : index
    %c0_13 = arith.constant 0 : index
    %c0_14 = arith.constant 0 : index
    %16 = vector.load %arg8[%c0_12, %c0_13, %c0_14] : memref<1x128x32xbf16, #tpu.memory_space<vmem>>, vector<1x128x32xbf16>
    %17 = vector.shape_cast %16 : vector<1x128x32xbf16> to vector<128x32xbf16>
    %cst_15 = arith.constant dense<0.000000e+00> : vector<16x32xf32>
    %18 = tpu.matmul %8, %17, %cst_15 {dimension_numbers = #tpu.dot_dimension_numbers<[1], [0], [0], [1], [0, 0, 1, 1], [], []>} : vector<16x128xbf16>, vector<128x32xbf16>, vector<16x32xf32> -> vector<16x32xf32>
    %c0_16 = arith.constant 0 : index
    %c0_17 = arith.constant 0 : index
    %c0_18 = arith.constant 0 : index
    %19 = vector.load %arg9[%c0_16, %c0_17, %c0_18] : memref<1x1x32xf32, #tpu.memory_space<vmem>>, vector<1x1x32xf32>
    %20 = vector.shape_cast %19 : vector<1x1x32xf32> to vector<1x32xf32>
    %21 = vector.broadcast %20 : vector<1x32xf32> to vector<16x32xf32>
    %22 = arith.addf %18, %21 : vector<16x32xf32>
    %c0_19 = arith.constant 0 : index
    %c0_20 = arith.constant 0 : index
    %c0_21 = arith.constant 0 : index
    %23 = vector.load %arg10[%c0_19, %c0_20, %c0_21] : memref<1x128x32xbf16, #tpu.memory_space<vmem>>, vector<1x128x32xbf16>
    %24 = vector.shape_cast %23 : vector<1x128x32xbf16> to vector<128x32xbf16>
    %cst_22 = arith.constant dense<0.000000e+00> : vector<16x32xf32>
    %25 = tpu.matmul %8, %24, %cst_22 {dimension_numbers = #tpu.dot_dimension_numbers<[1], [0], [0], [1], [0, 0, 1, 1], [], []>} : vector<16x128xbf16>, vector<128x32xbf16>, vector<16x32xf32> -> vector<16x32xf32>
    %c0_23 = arith.constant 0 : index
    %c0_24 = arith.constant 0 : index
    %c0_25 = arith.constant 0 : index
    %26 = vector.load %arg11[%c0_23, %c0_24, %c0_25] : memref<1x1x32xf32, #tpu.memory_space<vmem>>, vector<1x1x32xf32>
    %27 = vector.shape_cast %26 : vector<1x1x32xf32> to vector<1x32xf32>
    %28 = vector.broadcast %27 : vector<1x32xf32> to vector<16x32xf32>
    %29 = arith.addf %25, %28 : vector<16x32xf32>
    %30 = arith.truncf %15 : vector<8x32xf32> to vector<8x32xbf16>
    %31 = arith.truncf %22 : vector<16x32xf32> to vector<16x32xbf16>
    %cst_26 = arith.constant dense<0.000000e+00> : vector<8x16xf32>
    %32 = tpu.matmul %30, %31, %cst_26 {dimension_numbers = #tpu.dot_dimension_numbers<[1], [1], [0], [0], [0, 0, 1, 0], [], []>} : vector<8x32xbf16>, vector<16x32xbf16>, vector<8x16xf32> -> vector<8x16xf32>
    %c0_27 = arith.constant 0 : index
    %c0_28 = arith.constant 0 : index
    %33 = vector.load %arg5[%c0_27, %c0_28] : memref<8x16xf32, #tpu.memory_space<vmem>>, vector<8x16xf32>
    %34 = arith.addf %32, %33 : vector<8x16xf32>
    %cst_29 = arith.constant dense<0xFF800000> : vector<8xf32>
    %35 = vector.multi_reduction <maximumf>, %34, %cst_29 [1] : vector<8x16xf32> to vector<8xf32>
    %36 = vector.shape_cast %35 : vector<8xf32> to vector<8x1xf32>
    %37 = vector.broadcast %36 : vector<8x1xf32> to vector<8x16xf32>
    %38 = arith.subf %34, %37 : vector<8x16xf32>
    %39 = math.exp %38 : vector<8x16xf32>
    %cst_30 = arith.constant dense<0.000000e+00> : vector<8xf32>
    %40 = vector.multi_reduction <add>, %39, %cst_30 [1] : vector<8x16xf32> to vector<8xf32>
    %41 = vector.shape_cast %40 : vector<8xf32> to vector<8x1xf32>
    %42 = tpu.reciprocal %41 {approx = true} : vector<8x1xf32> -> vector<8x1xf32>
    %43 = vector.broadcast %42 : vector<8x1xf32> to vector<8x16xf32>
    %44 = arith.mulf %39, %43 : vector<8x16xf32>
    %45 = arith.truncf %44 : vector<8x16xf32> to vector<8x16xbf16>
    %46 = arith.truncf %29 : vector<16x32xf32> to vector<16x32xbf16>
    %cst_31 = arith.constant dense<0.000000e+00> : vector<8x32xf32>
    %47 = tpu.matmul %45, %46, %cst_31 {dimension_numbers = #tpu.dot_dimension_numbers<[1], [0], [0], [1], [0, 0, 1, 1], [], []>} : vector<8x16xbf16>, vector<16x32xbf16>, vector<8x32xf32> -> vector<8x32xf32>
    %c0_32 = arith.constant 0 : index
    %c0_33 = arith.constant 0 : index
    %48 = vector.load %arg15[%c0_32, %c0_33] : memref<8x128xf32, #tpu.memory_space<vmem>>, vector<8x128xf32>
    %49 = arith.truncf %47 : vector<8x32xf32> to vector<8x32xbf16>
    %c0_34 = arith.constant 0 : index
    %c0_35 = arith.constant 0 : index
    %c0_36 = arith.constant 0 : index
    %50 = vector.load %arg12[%c0_34, %c0_35, %c0_36] : memref<1x32x128xbf16, #tpu.memory_space<vmem>>, vector<1x32x128xbf16>
    %51 = vector.shape_cast %50 : vector<1x32x128xbf16> to vector<32x128xbf16>
    %cst_37 = arith.constant dense<0.000000e+00> : vector<8x128xf32>
    %52 = tpu.matmul %49, %51, %cst_37 {dimension_numbers = #tpu.dot_dimension_numbers<[1], [0], [0], [1], [0, 0, 1, 1], [], []>} : vector<8x32xbf16>, vector<32x128xbf16>, vector<8x128xf32> -> vector<8x128xf32>
    %53 = arith.addf %48, %52 : vector<8x128xf32>
    %c0_38 = arith.constant 0 : index
    %c0_39 = arith.constant 0 : index
    %54 = vector.load %arg15[%c0_38, %c0_39] : memref<8x128xf32, #tpu.memory_space<vmem>>, vector<8x128xf32>
    tpu.vector_store %arg15[%c0_38, %c0_39], %53 {strides = array<i32>} : memref<8x128xf32, #tpu.memory_space<vmem>>, vector<8x128xf32>,
    %c3_i32 = arith.constant 3 : i32
    %55 = arith.cmpi eq, %arg2, %c3_i32 : i32
    %56 = arith.extui %55 : i1 to i32
    %c0_i32_40 = arith.constant 0 : i32
    %57 = arith.cmpi ne, %56, %c0_i32_40 : i32
    scf.if %57 {
      %c0_41 = arith.constant 0 : index
      %c0_42 = arith.constant 0 : index
      %58 = vector.load %arg15[%c0_41, %c0_42] : memref<8x128xf32, #tpu.memory_space<vmem>>, vector<8x128xf32>
      %c0_43 = arith.constant 0 : index
      %c0_44 = arith.constant 0 : index
      %59 = vector.load %arg13[%c0_43, %c0_44] : memref<1x128xf32, #tpu.memory_space<vmem>>, vector<1x128xf32>
      %60 = vector.broadcast %59 : vector<1x128xf32> to vector<8x128xf32>
      %61 = arith.addf %58, %60 : vector<8x128xf32>
      %c0_45 = arith.constant 0 : index
      %c0_46 = arith.constant 0 : index
      %c0_47 = arith.constant 0 : index
      %62 = vector.load %arg14[%c0_45, %c0_46, %c0_47] : memref<1x8x128xf32, #tpu.memory_space<vmem>>, vector<1x8x128xf32>
      %63 = vector.shape_cast %62 : vector<1x8x128xf32> to vector<8x128xf32>
      %64 = vector.shape_cast %61 : vector<8x128xf32> to vector<1x8x128xf32>
      tpu.vector_store %arg14[%c0_45, %c0_46, %c0_47], %64 {strides = array<i32>} : memref<1x8x128xf32, #tpu.memory_space<vmem>>, vector<1x8x128xf32>,
    } else {
    }
    return
  }
  func.func @transform_0(%arg0: i32, %arg1: i32, %arg2: i32) -> (i32, i32, i32) {
    %c0_i32 = arith.constant 0 : i32
    %c0_i32_0 = arith.constant 0 : i32
    return %arg0, %arg1, %c0_i32 : i32, i32, i32
  }
  func.func @transform_1(%arg0: i32, %arg1: i32, %arg2: i32) -> (i32, i32, i32) {
    %c0_i32 = arith.constant 0 : i32
    %c0_i32_0 = arith.constant 0 : i32
    %c0_i32_1 = arith.constant 0 : i32
    return %arg0, %c0_i32, %c0_i32_0 : i32, i32, i32
  }
  func.func @transform_2(%arg0: i32, %arg1: i32, %arg2: i32) -> (i32, i32) {
    %c0_i32 = arith.constant 0 : i32
    %c0_i32_0 = arith.constant 0 : i32
    return %arg1, %c0_i32 : i32, i32
  }
  func.func @transform_3(%arg0: i32, %arg1: i32, %arg2: i32) -> (i32, i32, i32) {
    %c0_i32 = arith.constant 0 : i32
    %c0_i32_0 = arith.constant 0 : i32
    %c0_i32_1 = arith.constant 0 : i32
    return %arg2, %c0_i32, %c0_i32_0 : i32, i32, i32
  }
  func.func @transform_4(%arg0: i32, %arg1: i32, %arg2: i32) -> (i32, i32, i32) {
    %c0_i32 = arith.constant 0 : i32
    %c0_i32_0 = arith.constant 0 : i32
    %c0_i32_1 = arith.constant 0 : i32
    return %arg2, %c0_i32, %c0_i32_0 : i32, i32, i32
  }
  func.func @transform_5(%arg0: i32, %arg1: i32, %arg2: i32) -> (i32, i32, i32) {
    %c0_i32 = arith.constant 0 : i32
    %c0_i32_0 = arith.constant 0 : i32
    %c0_i32_1 = arith.constant 0 : i32
    return %arg2, %c0_i32, %c0_i32_0 : i32, i32, i32
  }
  func.func @transform_6(%arg0: i32, %arg1: i32, %arg2: i32) -> (i32, i32, i32) {
    %c0_i32 = arith.constant 0 : i32
    %c0_i32_0 = arith.constant 0 : i32
    %c0_i32_1 = arith.constant 0 : i32
    return %arg2, %c0_i32, %c0_i32_0 : i32, i32, i32
  }
  func.func @transform_7(%arg0: i32, %arg1: i32, %arg2: i32) -> (i32, i32, i32) {
    %c0_i32 = arith.constant 0 : i32
    %c0_i32_0 = arith.constant 0 : i32
    %c0_i32_1 = arith.constant 0 : i32
    return %arg2, %c0_i32, %c0_i32_0 : i32, i32, i32
  }
  func.func @transform_8(%arg0: i32, %arg1: i32, %arg2: i32) -> (i32, i32, i32) {
    %c0_i32 = arith.constant 0 : i32
    %c0_i32_0 = arith.constant 0 : i32
    %c0_i32_1 = arith.constant 0 : i32
    return %arg2, %c0_i32, %c0_i32_0 : i32, i32, i32
  }
  func.func @transform_9(%arg0: i32, %arg1: i32, %arg2: i32) -> (i32, i32, i32) {
    %c0_i32 = arith.constant 0 : i32
    %c0_i32_0 = arith.constant 0 : i32
    %c0_i32_1 = arith.constant 0 : i32
    return %arg2, %c0_i32, %c0_i32_0 : i32, i32, i32
  }
  func.func @transform_10(%arg0: i32, %arg1: i32, %arg2: i32) -> (i32, i32) {
    %c0_i32 = arith.constant 0 : i32
    %c0_i32_0 = arith.constant 0 : i32
    %c0_i32_1 = arith.constant 0 : i32
    return %c0_i32, %c0_i32_0 : i32, i32
  }
  func.func @transform_11(%arg0: i32, %arg1: i32, %arg2: i32) -> (i32, i32, i32) {
    %c0_i32 = arith.constant 0 : i32
    %c0_i32_0 = arith.constant 0 : i32
    return %arg0, %arg1, %c0_i32 : i32, i32, i32
  }
}

</mosaic_0001>

<bundles_post_ra>
// kernel: tpu_custom_call.1
= control target key start
LH: loop header
LB: loop body
LE: loop exit
PB: predicated region body
PF: predicated region fallthrough
CT: control target
= control target key end

     0   :  { %s2017_s0 = inlined_call_operand.vmem [shape: f32[2,8,128], index: 0, kind: input, shape index: {}]   ;;  %s2018_s1 = inlined_call_operand.vmem [shape: f32[2,16,128], index: 1, kind: input, shape index: {}]   ;;  %s2019_s2 = inlined_call_operand.vmem [shape: f32[8,16], index: 2, kind: input, shape index: {}]   ;;  %s2020_s3 = inlined_call_operand.vmem [shape: bf16[4,128,32], index: 3, kind: input, shape index: {}]   ;;  %s2021_s4 = inlined_call_operand.vmem [shape: f32[4,1,32], index: 4, kind: input, shape index: {}]   ;;  %s2022_s5 = inlined_call_operand.vmem [shape: bf16[4,128,32], index: 5, kind: input, shape index: {}]   ;;  %s2023_s6 = inlined_call_operand.vmem [shape: f32[4,1,32], index: 6, kind: input, shape index: {}]   ;;  %s2024_s7 = inlined_call_operand.vmem [shape: bf16[4,128,32], index: 7, kind: input, shape index: {}]   ;;  %s2025_s8 = inlined_call_operand.vmem [shape: f32[4,1,32], index: 8, kind: input, shape index: {}]   ;;  %s2026_s9 = inlined_call_operand.vmem [shape: bf16[4,32,128], index: 9, kind: input, shape index: {}]   ;;  %s2027_s10 = inlined_call_operand.vmem [shape: f32[1,128], index: 10, kind: input, shape index: {}]   ;;  %s2028_s11 = inlined_call_operand.hbm [shape: f32[2,8,128], index: 11, kind: output, shape index: {}]  }
   0x1   :  { %2043 = sst [smem:[#allocation18_spill]] %s2017_s0 }
   0x2   :  { %2044 = sst [smem:[#allocation19_spill]] %s2018_s1 }
   0x3   :  { %2045 = sst [smem:[#allocation20_spill]] %s2028_s11 }
   0x4   :  { %16 = vsyncpa [#allocation4], 0 }
   0x5   :  { %18 = vsyncpa [#allocation4 + $0x1], 0  ;;  %s1737_s17 = smov 0   ;;  %s1739_s18 = smov 0  }
   0x6   :  { %s1741_s19 = smov 0   ;;  %s1743_s20 = smov 0  }
   0x7   :  { %s1745_s21 = smov 0   ;;  %s1747_s22 = smov 0  }
   0x8   :  { %s1749_s23 = smov 0   ;;  %s1751_s24 = smov 0  }
   0x9 LB: > { %2046 = sst [smem:[#allocation6_spill]] %s1643_s17  ;;  %s1297_s25 = sadd.s32 4294967295, %s1671_s24   ;;  %s1671_s24 = sphi %s1751_s24, %s24_s24   ;;  %s1667_s23 = sphi %s1749_s23, %s2077_s23   ;;  %s1663_s22 = sphi %s1747_s22, %s2076_s22   ;;  %s1659_s21 = sphi %s1745_s21, %s2075_s21   ;;  %s1655_s20 = sphi %s1743_s20, %s2074_s20   ;;  %s1651_s19 = sphi %s1741_s19, %s2073_s19   ;;  %s1647_s18 = sphi %s1739_s18, %s2072_s18   ;;  %s1643_s17 = sphi %s1737_s17, %s2071_s17  }
   0xa   : > { %2047 = sst [smem:[#allocation7_spill]] %s1647_s18  ;;  %s1298_s26 = sadd.s32 4294967294, %s1671_s24  }
   0xb   : > { %2048 = sst [smem:[#allocation8_spill]] %s1651_s19  ;;  %s36_s27 = sadd.s32 1, %s1663_s22 }
   0xc   : > { %2049 = sst [smem:[#allocation9_spill]] %s1659_s21  ;;  %p37_p0 = scmp.ge.s32.totalorder %s36_s27, 4 }
   0xd   : > { %2050 = sst [smem:[#allocation10_spill]] %s1663_s22  ;;  %s43_s28 = sadd.s32 1, %s1667_s23 }
   0xe   : > { %2051 = sst [smem:[#allocation11_spill]] %s1667_s23  ;;  %p345_p1 = scmp.ne.s32.totalorder %s1651_s19, %s1647_s18 }
   0xf   : > { %2052 = sst [smem:[#allocation12_spill]] %s1671_s24  ;;  %p346_p2 = scmp.eq.s32.totalorder %s1297_s25, 7 }
  0x10   : > { %s2079_s27 = smov (%p37_p0, %s36_s27), 0  ;;  %s2081_s28 = smov (!%p37_p0, %s43_s28), %s1667_s23 }
  0x11   : > { %2053 = sst [smem:[#allocation13_spill]] %s2079_s27  ;;  %p1786_p3 = por %p346_p2, %p345_p1 }
  0x12   : > { %p351_p4 = scmp.ne.s32.totalorder %s1647_s18, %s1643_s17  ;;  %p45_p5 = scmp.ge.s32.totalorder %s2081_s28, 2 }
  0x13   : > { %s2054_s29 = scalar_select %p1786_p3, 1, 0 }
  0x14   : > { %p352_p6 = scmp.eq.s32.totalorder %s1298_s26, 7  ;;  %p1302_p7 = scmp.ge.s32.totalorder %s1671_s24, 1 }
  0x15   : > { %2055 = sst [smem:[#allocation14_spill]] %s2054_s29  ;;  %p448_p8 = scmp.lt.s32.totalorder %s1671_s24, 9 }
  0x16   : > { %s2083_s28 = smov (%p45_p5, %s2081_s28), 0  ;;  %p1796_p9 = por %p352_p6, %p351_p4 }
  0x17   : > { %2056 = sst [smem:[#allocation15_spill]] %s2083_s28  ;;  %p449_p10 = pnand %p1302_p7, %p448_p8 }
  0x18   : > { %s2057_s30 = scalar_select %p1796_p9, 1, 0 }
  0x19   : > { %s330_s12 = ssub.s32 %s1667_s23, %s2083_s28  ;;  %s335_s13 = sadd.s32 1, %s1651_s19 }
  0x1a   : > { %2058 = sst [smem:[#allocation16_spill]] %s2057_s30  ;;  %p333_p11 = scmp.eq.s32.totalorder %s330_s12, 0 }
  0x1b   : > { %452 = sbr.rel (%p449_p10) target bundleno = 1303 (0x517), region = 64  ;;  %s2032_s15 = sand.u32 (!%p449_p10), 1, %s1647_s18  }
  0x1c   : > { %s1804_s14 = scalar_select %p333_p11, %s1651_s19, %s335_s13  }
  0x1d   : > { %p528_p12 = scmp.lt.s32.totalorder (!%p449_p10), %s1659_s21, 1  ;;  %s1810_s16 = sshll.u32 (!%p449_p10), %s2032_s15, 3 }
  0x1e   : > { %2059 = sst [smem:[#allocation17_spill]] %s1804_s14  ;;  %p544_p13 = scmp.lt.s32.totalorder (!%p449_p10), %s1655_s20, 3 }
  0x1f   : > { %s2060_s0 = sld [smem:[#allocation18_spill]] (!%p449_p10)  ;;  %s2061_s1 = sld [smem:[#allocation19_spill]] (!%p449_p10) }
  0x20   : > { %p1315_p0 = scmp.ne.s32.totalorder (!%p449_p10), %s1655_s20, 0 }
  0x22   : > { %s529_s25 = scalar_select %p528_p12, %s1659_s21, 1 }
  0x23   : > { %s1815_s26 = scalar_select %p544_p13, %s1655_s20, 3 }
  0x24   : > { %s1304_s12 = sshll.u32 %s529_s25, 3  ;;  %s1354_s13 = sshll.u32 %s529_s25, 4  ;;  %v1673_v0 = vmov (!%p1315_p0), 0.0  }
  0x25   : > { %s1820_s23 = scalar_lea.vmem %s2060_s0, %s1304_s12  ;;  %s1825_s14 = scalar_lea.vmem %s2061_s1, %s1354_s13  ;;  %578 = vst [vmem:[#allocation2] sm:$0xff] (!%p1315_p0), %v1673_v0 }
  0x26   : > { %s1355_s19 = sshll.u32 %s1815_s26, 6  ;;  %s559_s22 = scalar_lea.vmem %s2023_s6, %s1815_s26 }
  0x27   : > { %s1835_s18 = scalar_lea.vmem %s2020_s3, %s1355_s19  ;;  %s1840_s27 = scalar_lea.vmem %s2022_s5, %s1355_s19 }
  0x28   : > { %s1849_s0 = scalar_lea.vmem %s2024_s7, %s1355_s19  ;;  %s567_s11 = scalar_lea.vmem %s2025_s8, %s1815_s26 }
  0x29   : > { %s1358_s29 = sshll.u32 %s1815_s26, 4  ;;  %s527_s25 = scalar_lea.vmem [#allocation3], %s1810_s16 }
  0x2a   : > { %s1859_s21 = scalar_lea.vmem %s2026_s9, %s1358_s29  ;;  %577 = sbr.rel (%p1315_p0) target bundleno = 49 (0x31), region = 68 }
  0x31 PF: > { %v1547_v1 = vld [vmem:[%s1840_s27] sm:$0xff]   ;;  %v1674_v2 = vmov 0.0   ;;  %v1548_v3 = vld [vmem:[%s1840_s27 + $0x8] sm:$0xff]   ;;  %vm1675_vm0 = vmmov 0   ;;  %v1550_v6 = vld [vmem:[%s1840_s27 + $0x10] sm:$0xff]   ;;  %s2062_s24 = scalar_lea.vmem %s2021_s4, %s1815_s26  ;;  %vm922_vm1 = vcmask 261120  }
  0x32   : > { %1413 = vmatprep.subr.bf16.mxu1 %v1674_v2  ;;  %1393 = vmatprep.subr.bf16.mxu0 %v1674_v2  ;;  %v1549_v4 = vld [vmem:[%s1835_s18] sm:$0xff]   ;;  %v1551_v5 = vld [vmem:[%s1835_s18 + $0x8] sm:$0xff]   ;;  %v1553_v7 = vld [vmem:[%s1835_s18 + $0x10] sm:$0xff]   ;;  %vm969_vm2 = vcmask 130048   ;;  %p1348_p1 = scmp.ne.s32.totalorder %s1655_s20, 3 }
  0x33   : > { %1414 = vmatpush3.bf16.msra.mxu1 %v1547_v1  ;;  %1429 = vmatprep.mubr.msk.bf16.mxu1 %vm1675_vm0, %v1674_v2  ;;  %v1552_v8 = vld [vmem:[%s1840_s27 + $0x18] sm:$0xff]   ;;  %v1554_v10 = vld [vmem:[%s1840_s27 + $0x20] sm:$0xff]   ;;  %v1556_v12 = vld [vmem:[%s1840_s27 + $0x28] sm:$0xff]  }
  0x34   : > { %1415 = vmatprep.subr.bf16.mxu1 %v1674_v2  ;;  %1409 = vmatprep.mubr.msk.bf16.mxu0 %vm1675_vm0, %v1674_v2  ;;  %v1555_v9 = vld [vmem:[%s1835_s18 + $0x18] sm:$0xff]   ;;  %v1557_v11 = vld [vmem:[%s1835_s18 + $0x20] sm:$0xff]   ;;  %v1559_v13 = vld [vmem:[%s1835_s18 + $0x28] sm:$0xff]  }
  0x35   : > { %1394 = vmatpush3.bf16.msra.mxu0 %v1549_v4  ;;  %v1558_v14 = vld [vmem:[%s1840_s27 + $0x30] sm:$0xff]   ;;  %v1560_v16 = vld [vmem:[%s1840_s27 + $0x38] sm:$0xff]   ;;  %v581_v17 = vld [vmem:[%s1825_s14] sm:$0xff] }
  0x36   : > { %1395 = vmatprep.subr.bf16.mxu0 %v1674_v2  ;;  %v1561_v15 = vld [vmem:[%s1835_s18 + $0x30] sm:$0xff]   ;;  %v582_v18 = vld [vmem:[%s1825_s14 + $0x8] sm:$0xff]  ;;  %v1562_v19 = vld [vmem:[%s1835_s18 + $0x38] sm:$0xff]  }
  0x37   : > { %1416 = vmatpush3.bf16.msra.mxu1 %v1548_v3  ;;  %v579_v20 = vld [vmem:[%s1820_s23] sm:$0xff]  ;;  %v583_v21 = vpack.c.bf16 %v582_v18, %v581_v17  ;;  %v1564_v40 = vld [vmem:[%s1849_s0 + $0x8] sm:$0xff]   ;;  %v1565_v41 = vld [vmem:[%s1849_s0 + $0x10] sm:$0xff]  }
  0x38   : > { %1417 = vmatprep.subr.bf16.mxu1 %v1674_v2  ;;  %v580_v22 = vpack.c.bf16 %v579_v20, %v579_v20  ;;  %v1325_v23 = vld [vmem:[%s559_s22] ss:$0 sm:$0xff]  ;;  %v1566_v42 = vld [vmem:[%s1849_s0 + $0x18] sm:$0xff]   ;;  %v1568_v44 = vld [vmem:[%s1849_s0 + $0x28] sm:$0xff]  }
  0x39   : > { %1396 = vmatpush3.bf16.msra.mxu0 %v1551_v5  ;;  %v1316_v32 = vld [vmem:[%s2062_s24] ss:$0 sm:$0xff]  ;;  %v1569_v45 = vld [vmem:[%s1849_s0 + $0x30] sm:$0xff]   ;;  %v1570_v46 = vld [vmem:[%s1849_s0 + $0x38] sm:$0xff]  }
  0x3a   : > { %1397 = vmatprep.subr.bf16.mxu0 %v1674_v2  ;;  %v1563_v39 = vld [vmem:[%s1849_s0] sm:$0xff]  }
  0x3b   : > { %1418 = vmatpush3.bf16.msra.mxu1 %v1550_v6  ;;  %v1567_v43 = vld [vmem:[%s1849_s0 + $0x20] sm:$0xff]  }
  0x3c   : > { %1419 = vmatprep.subr.bf16.mxu1 %v1674_v2  ;;  %v921_v47 = vld [vmem:[%s2019_s2] sm:$0xff] }
  0x3d   : > { %1398 = vmatpush3.bf16.msra.mxu0 %v1553_v7  ;;  %v1334_v61 = vld [vmem:[%s567_s11] ss:$0 sm:$0xff] }
  0x3e   : > { %1399 = vmatprep.subr.bf16.mxu0 %v1674_v2  ;;  %v1571_v7 = vld [vmem:[%s1859_s21] sm:$0xff]  }
  0x3f   : > { %1420 = vmatpush3.bf16.msra.mxu1 %v1552_v8 }
  0x40   : > { %1421 = vmatprep.subr.bf16.mxu1 %v1674_v2 }
  0x41   : > { %1400 = vmatpush3.bf16.msra.mxu0 %v1555_v9  ;;  %v1572_v9 = vld [vmem:[%s1859_s21 + $0x8] sm:$0xff]  }
  0x42   : > { %1401 = vmatprep.subr.bf16.mxu0 %v1674_v2 }
  0x43   : > { %1422 = vmatpush3.bf16.msra.mxu1 %v1554_v10 }
  0x44   : > { %1423 = vmatprep.subr.bf16.mxu1 %v1674_v2 }
  0x45   : > { %1402 = vmatpush3.bf16.msra.mxu0 %v1557_v11 }
  0x46   : > { %1403 = vmatprep.subr.bf16.mxu0 %v1674_v2 }
  0x47   : > { %1424 = vmatpush3.bf16.msra.mxu1 %v1556_v12 }
  0x48   : > { %1425 = vmatprep.subr.bf16.mxu1 %v1674_v2 }
  0x49   : > { %1404 = vmatpush3.bf16.msra.mxu0 %v1559_v13 }
  0x4a   : > { %1405 = vmatprep.subr.bf16.mxu0 %v1674_v2 }
  0x4b   : > { %1426 = vmatpush3.bf16.msra.mxu1 %v1558_v14 }
  0x4c   : > { %1427 = vmatprep.subr.bf16.mxu1 %v1674_v2 }
  0x4d   : > { %1406 = vmatpush3.bf16.msra.mxu0 %v1561_v15  ;;  %v1026_v15 = vld [vmem:[#allocation2] sm:$0xff] }
  0x4e   : > { %1407 = vmatprep.subr.bf16.mxu0 %v1674_v2 }
  0x4f   : > { %1428 = vmatpush3.bf16.msra.mxu1 %v1560_v16 }
  0x50   : > { %1453 = vmatprep.subr.bf16.mxu1 %v1674_v2 }
  0x51   : > { %1408 = vmatpush3.bf16.msra.mxu0 %v1562_v19 }
  0x52   : > { %1430 = vmatmul.mubr.bf16.vlgmr.msra.gmra.mrb[0].mxu1 %v583_v21  ;;  %1433 = vmatprep.subr.bf16.mxu0 %v1674_v2 }
  0x53   : > { %1455 = vmatprep.mubr.msk.bf16.mxu1 %vm1675_vm0, %v1674_v2 }
  0x54   : > { %1410 = vmatmul.mubr.bf16.vlgmr.msra.gmra.mrb[0].mxu0 %v580_v22 }
  0x55   : > { %1449 = vmatprep.mubr.msk.bf16.mxu0 %vm1675_vm0, %v1674_v2  ;;  %1434 = vmatpush3.bf16.msra.mxu0 %v1563_v39 }
  0x56   : > { %1435 = vmatprep.subr.bf16.mxu0 %v1674_v2 }
  0x59   : > { %1436 = vmatpush3.bf16.msra.mxu0 %v1564_v40 }
  0x5a   : > { %1437 = vmatprep.subr.bf16.mxu0 %v1674_v2 }
  0x5d   : > { %1438 = vmatpush3.bf16.msra.mxu0 %v1565_v41 }
  0x5e   : > { %1439 = vmatprep.subr.bf16.mxu0 %v1674_v2 }
  0x61   : > { %1440 = vmatpush3.bf16.msra.mxu0 %v1566_v42 }
  0x62   : > { %1441 = vmatprep.subr.bf16.mxu0 %v1674_v2 }
  0x65   : > { %1442 = vmatpush3.bf16.msra.mxu0 %v1567_v43 }
  0x66   : > { %1443 = vmatprep.subr.bf16.mxu0 %v1674_v2 }
  0x69   : > { %1444 = vmatpush3.bf16.msra.mxu0 %v1568_v44 }
  0x6a   : > { %1445 = vmatprep.subr.bf16.mxu0 %v1674_v2 }
  0x6d   : > { %1446 = vmatpush3.bf16.msra.mxu0 %v1569_v45 }
  0x6e   : > { %1447 = vmatprep.subr.bf16.mxu0 %v1674_v2 }
  0x71   : > { %1448 = vmatpush3.bf16.msra.mxu0 %v1570_v46 }
  0x74   : > { %1450 = vmatmul.mubr.bf16.vlgmr.msra.gmra.mrb[4].mxu0 %v583_v21  ;;  %v1349_v21 = vld [vmem:[%s2027_s10] ss:$0 sm:$0xff] (!%p1348_p1) }
 0x125   : > { %v800_v24 = vpop.f32.mrb[0].mxu1 }
 0x126   : > { %v1431_v25 = vpop.f32.mrb[1].mxu1  ;;  %v801_v28 = vadd.f32 %v1325_v23, %v800_v24 }
 0x127   : > { %v803_v26 = vpop.f32.mrb[2].mxu1  ;;  %v689_v27 = vpop.f32.mrb[0].mxu0 }
 0x128   : > { %v804_v29 = vadd.f32 %v1325_v23, %v803_v26  ;;  %v1432_v30 = vpop.f32.mrb[3].mxu1  ;;  %v1411_v31 = vpop.f32.mrb[1].mxu0  ;;  %v690_v36 = vadd.f32 %v1316_v32, %v689_v27 }
 0x129   : > { %v692_v33 = vpop.f32.mrb[2].mxu0 }
 0x12a   : > { %v920_v34 = vpack.c.bf16 %v804_v29, %v801_v28  ;;  %v1412_v35 = vpop.f32.mrb[3].mxu0  ;;  %v919_v38 = vpack.c.bf16 %v690_v36, %v690_v36 }
 0x12c   : > { %v927_v37 = vsel %vm922_vm1, %v920_v34, 0 }
 0x12d   : > { %1454 = vmatpush3.bf16.xpose.msra.mxu1 %v927_v37 }
 0x12e   : > { %1459 = vmatprep.subr.bf16.mxu1 %v1674_v2 }
 0x134   : > { %1456 = vmatmul.mubr.msk.bf16.vlgmr.msra.gmra.mrb[4].mxu1 %vm922_vm1, %v919_v38 }
 0x135   : > { %1461 = vmatprep.mubr.msk.bf16.mxu1 %vm1675_vm0, %v1674_v2 }
 0x147   : > { %v912_v54 = vpop.f32.mrb[4].mxu0 }
 0x148   : > { %v1451_v55 = vpop.f32.mrb[5].mxu0  ;;  %v913_v62 = vadd.f32 %v1334_v61, %v912_v54 }
 0x149   : > { %v915_v63 = vpop.f32.mrb[6].mxu0 }
 0x14a   : > { %v1452_v0 = vpop.f32.mrb[7].mxu0  ;;  %v916_v1 = vadd.f32 %v1334_v61, %v915_v63 }
 0x14c   : > { %v982_v3 = vpack.c.bf16 %v916_v1, %v913_v62 }
 0x14e   : > { %1460 = vmatpush3.bf16.msra.mxu1 %v982_v3 }
 0x14f   : > { %1465 = vmatprep.subr.bf16.mxu1 %v1674_v2 }
 0x207   : > { %v963_v48 = vpop.f32.mrb[4].mxu1 }
 0x208   : > { %v964_v49 = vadd.f32 %v963_v48, %v921_v47  ;;  %v1457_v50 = vpop.f32.mrb[5].mxu1 }
 0x209   : > { %v966_v51 = vpop.f32.mrb[6].mxu1 }
 0x20a   : > { %v1458_v52 = vpop.f32.mrb[7].mxu1  ;;  %v970_v53 = vsel %vm969_vm2, %v964_v49, -inf }
 0x20b   : > { %971 = vmax.xlane.f32.xlu0 %v970_v53 }
 0x298   : > { %v972_v56 = vpop.xlane.xlu0 %971 }
 0x299   : > { %v973_v57 = vsub.f32 %v964_v49, %v972_v56 }
 0x29b   : > { %v974_v58 = vmul.f32 1.442695, %v973_v57 }
 0x29d   : > { %1573 = vpow2.f32 %v974_v58 }
 0x2a7   : > { %v1574_v59 = vpop.eup %1573 }
 0x2a8   : > { %v976_v60 = vsel %vm969_vm2, %v1574_v59, 0.0 }
 0x2a9   : > { %977 = vadd.xlane.f32.xlu0 %v976_v60 }
 0x336   : > { %v978_v4 = vpop.xlane.xlu0 %977 }
 0x337   : > { %1575 = vrcp.f32 %v978_v4 }
 0x341   : > { %v1576_v5 = vpop.eup %1575 }
 0x342   : > { %v980_v6 = vmul.f32 %v1576_v5, %v1574_v59 }
 0x344   : > { %v981_v8 = vpack.c.bf16 %v980_v6, %v980_v6 }
 0x346   : > { %1462 = vmatmul.mubr.msk.bf16.vlgmr.msra.gmra.mrb[8].mxu1 %vm969_vm2, %v981_v8 }
 0x347   : > { %1466 = vmatpush3.bf16.msra.mxu1 %v1571_v7  ;;  %1469 = vmatprep.mubr.msk.bf16.mxu1 %vm1675_vm0, %v1674_v2 }
 0x348   : > { %1467 = vmatprep.subr.bf16.mxu1 %v1674_v2 }
 0x34b   : > { %1468 = vmatpush3.bf16.msra.mxu1 %v1572_v9 }
 0x419   : > { %v1020_v10 = vpop.f32.mrb[8].mxu1 }
 0x41a   : > { %v1027_v11 = vpack.c.bf16 %v1020_v10, %v1020_v10  ;;  %v1463_v12 = vpop.f32.mrb[9].mxu1 }
 0x41b   : > { %v1023_v13 = vpop.f32.mrb[10].mxu1 }
 0x41c   : > { %v1464_v14 = vpop.f32.mrb[11].mxu1  ;;  %1470 = vmatmul.mubr.msk.bf16.vlgmr.msra.gmra.mrb[12].mxu1 %vm922_vm1, %v1027_v11 }
 0x4ec   : > { %1092 = sbr.rel (%p1348_p1) target bundleno = 1277 (0x4fd), region = 72 }
 0x4ef   : > { %v1081_v16 = vpop.f32.mrb[12].mxu1 }
 0x4f0   : > { %v1087_v17 = vadd.f32 %v1081_v16, %v1026_v15  ;;  %v1471_v18 = vpop.f32.mrb[13].mxu1 }
 0x4f1   : > { %v1084_v19 = vpop.f32.mrb[14].mxu1 }
 0x4f2   : > { %1088 = vst [vmem:[#allocation2] sm:$0xff] %v1087_v17  ;;  %v1472_v20 = vpop.f32.mrb[15].mxu1 }
 0x4f9   : > { %v1093_v2 = vld [vmem:[#allocation2] sm:$0xff] }
 0x4fa   : > { %v1101_v22 = vadd.f32 %v1349_v21, %v1093_v2 }
 0x4fc   : > { %1102 = vst [vmem:[%s527_s25] sm:$0xff] %v1101_v22 }
 0x4fd PF: > { %s2063_s22 = sld [smem:[#allocation9_spill]]  ;;  %s2066_s29 = sld [smem:[#allocation20_spill]] }
 0x4fe   : > { %s2064_s15 = sld [smem:[#allocation7_spill]]  ;;  %s1118_s21 = sshll.u32 %s527_s25, 4  ;;  %s1119_s21 = int_to_ptr.vmem [resolvable:$true] %s1118_s21 }
 0x4ff   : > { %s1577_s19 = scalar_lea.vmem %s1119_s21, 128  ;;  %s1676_s23 = smov [#allocation3]  }
 0x500   : > { %p1578_p2 = scmp.ne.s32.totalorder %s1119_s21, %s1577_s19  ;;  %s1581_s24 = sshll.u32 %s1676_s23, 4  ;;  %s1582_s24 = int_to_ptr.vmem [resolvable:$false] %s1581_s24 }
 0x501   : > { %s1583_s14 = scalar_lea.vmem %s1582_s24, 256  ;;  %p1584_p6 = scmp.lt.s32.totalorder %s1119_s21, %s1582_s24 }
 0x502   : > { %p1579_p4 = pnand %p1578_p2, %p1786_p3  ;;  %p1585_p7 = scmp.lt.s32.totalorder %s1583_s14, %s1577_s19 }
 0x503   : > { %s1351_s17 = sshll.u32 %s2063_s22, 7 }
 0x504   : > { %s1966_s20 = scalar_lea.hbm %s2066_s29, %s1351_s17  ;;  %s2067_s1 = sand.u32 1, %s2064_s15  }
 0x505   : > { %s1104_s18 = scalar_lea.sflag [#allocation4], %s2067_s1  ;;  %p1580_p5 = pneg %p1579_p4 }
 0x506   : > { %p1586_p8 = por %p1585_p7, %p1584_p6 }
 0x508   : > { %p1587_p10 = pnand %p1586_p8, %p1580_p5 }
 0x50a   : > { %1590 = shalt.err (!%p1587_p10)
}
 0x50b   : > { %s1591_s16 = scalar_lea.hbm %s1966_s20, 128  ;;  %s1595_s0 = scalar_lea.hbm %s2066_s29, 256 }
 0x50c   : > { %p1592_p11 = scmp.ne.s32.totalorder %s1966_s20, %s1591_s16  ;;  %p1596_p0 = scmp.lt.u32.totalorder %s1966_s20, %s2066_s29 }
 0x50d   : > { %p1597_p1 = scmp.lt.u32.totalorder %s1595_s0, %s1591_s16  ;;  %p1599_p4 = scmp.lt.u32.totalorder %s1591_s16, %s1966_s20 }
 0x50e   : > { %p1593_p12 = pnand %p1592_p11, %p1786_p3 }
 0x50f   : > { %p1598_p2 = por %p1597_p1, %p1596_p0 }
 0x510   : > { %p1594_p13 = pneg %p1593_p12 }
 0x511   : > { %p1600_p5 = por %p1599_p4, %p1598_p2 }
 0x513   : > { %p1601_p6 = pnand %p1600_p5, %p1594_p13 }
 0x515   : > { %1604 = shalt.err (!%p1601_p6)
}
 0x516   : > { %1473 = dma.vmem_to_hbm [thread:$0]  (%p1786_p3), %s1119_s21, 128, %s1966_s20, %s1104_s18  }
 0x517 PF: > { %s2068_s12 = sld [smem:[#allocation12_spill]]  ;;  %s2069_s22 = sld [smem:[#allocation6_spill]] }
 0x51d   : > { %p1479_p7 = scmp.ge.s32.totalorder %s2068_s12, 2  ;;  %s1130_s17 = sand.u32 1, %s2069_s22  }
 0x51e   : > { %s1131_s30 = scalar_lea.sflag [#allocation4], %s1130_s17 }
 0x51f   : > { %p1476_p8 = pnand %p1479_p7, %p1796_p9 }
 0x521   : > { %1638 = dma.done.wait (!%p1476_p8), %s1131_s30, 128  }
 0x522   : > { %1640 = vsyncadd (!%p1476_p8), %s1131_s30, 4294967168  ;;  %s24_s24 = sadd.s32 1, %s2068_s12   ;;  %s2071_s17 = sld [smem:[#allocation7_spill]] }
 0x523   : > { %p21_p10 = scmp.ge.s32.totalorder %s24_s24, 10   ;;  %s2072_s18 = sld [smem:[#allocation8_spill]] }
 0x524   : > { %s2073_s19 = sld [smem:[#allocation17_spill]]  ;;  %s2074_s20 = sld [smem:[#allocation10_spill]] }
 0x525   : > { %s2075_s21 = sld [smem:[#allocation11_spill]]  ;;  %s2076_s22 = sld [smem:[#allocation13_spill]] }
 0x526   : > { %s2077_s23 = sld [smem:[#allocation15_spill]]  ;;  %23 = sbr.rel (!%p21_p10) target bundleno = 9 (0x9), region = 134 }
 0x52d   :  { %1136 = vsyncpa [#allocation4], 1 }
 0x52e   :  { %1138 = vsyncpa [#allocation4 + $0x1], 1 }

</bundles_post_ra>
